<compile_context>
chip_gen: v7x
topology: tpu7x:2x2x1
jax: 0.10.0
libtpu: 0.0.40
codegen_flags: <defaults>
</compile_context>

<pallas_src>
import functools

import jax
import jax.numpy as jnp
from jax.experimental import pallas as pl
from jax.experimental.pallas import tpu as pltpu


# ---------------------------------------------------------------------------
# Kernel 1: hoisted per-relation transform + self-loop/bias
# ---------------------------------------------------------------------------
def _transform_kernel(h_ref, w_ref, wself_ref, b_ref, hw_ref, self_ref):
    r = pl.program_id(1)

    hw_ref[0] = jnp.dot(
        h_ref[...], w_ref[0], preferred_element_type=jnp.float32
    ).astype(hw_ref.dtype)

    @pl.when(r == 0)
    def _():
        self_ref[...] = (
            jnp.dot(h_ref[...], wself_ref[...], preferred_element_type=jnp.float32)
            + b_ref[...]
        ).astype(self_ref.dtype)


# ---------------------------------------------------------------------------
# Kernel 2: tiled, norm-weighted aggregation + self loop + ReLU
# ---------------------------------------------------------------------------
def _aggregate_kernel(nz_ref, a_ref, hw_ref, self_ref, o_ref):
    i = pl.program_id(0)
    r = pl.program_id(1)
    k = pl.program_id(2)
    nr = pl.num_programs(1)
    nk = pl.num_programs(2)

    # Initialize the resident output block with the self-loop + bias term.
    @pl.when((r == 0) & (k == 0))
    def _():
        o_ref[...] = self_ref[...]

    # Skip the MXU work for all-zero adjacency tiles (sparse graphs).
    @pl.when(nz_ref[(i * nr + r) * nk + k] > 0)
    def _():
        o_ref[...] += jnp.dot(
            a_ref[0], hw_ref[0], preferred_element_type=jnp.float32
        ).astype(o_ref.dtype)

    # Fused activation at the end of the (r, k) reduction.
    @pl.when((r == nr - 1) & (k == nk - 1))
    def _():
        o_ref[...] = jnp.maximum(o_ref[...], 0.0)


@functools.partial(jax.jit, static_argnames=("tm", "tk"))
def rgcn_forward(adj, features, weights, w_self, bias, *, tm=128, tk=128):
    """adj: [R, N, N] f32, features: [N, Din], weights: [R, Din, Dout],
    w_self: [Din, Dout], bias: [Dout] -> out: [N, Dout]"""
    R, N, _ = adj.shape
    Din = features.shape[1]
    Dout = weights.shape[2]
    assert N % tm == 0 and N % tk == 0, "N must be divisible by the tile sizes"
    ni = N // tm
    nk = N // tk

    bias2d = bias.reshape(1, Dout)

    # ---- Kernel 1: HW[r] = H @ W_r (bf16), SELF = H @ W_self + b (f32) ----
    hw, self_msg = pl.pallas_call(
        _transform_kernel,
        out_shape=(
            jax.ShapeDtypeStruct((R, N, Dout), jnp.bfloat16),
            jax.ShapeDtypeStruct((N, Dout), jnp.float32),
        ),
        grid_spec=pltpu.PrefetchScalarGridSpec(
            num_scalar_prefetch=0,
            grid=(ni, R),
            in_specs=[
                pl.BlockSpec((tm, Din), lambda i, r: (i, 0)),          # H row tile
                pl.BlockSpec((1, Din, Dout), lambda i, r: (r, 0, 0)),  # W_r
                pl.BlockSpec((Din, Dout), lambda i, r: (0, 0)),        # W_self
                pl.BlockSpec((1, Dout), lambda i, r: (0, 0)),          # bias
            ],
            out_specs=[
                pl.BlockSpec((1, tm, Dout), lambda i, r: (r, i, 0)),   # HW
                pl.BlockSpec((tm, Dout), lambda i, r: (i, 0)),         # SELF
            ],
        ),
        compiler_params=pltpu.CompilerParams(
            dimension_semantics=("parallel", "arbitrary")
        ),
    )(features, weights, w_self, bias2d)

    # ---- Glue: bf16 adjacency + per-tile nonzero table (zero-tile skip) ----
    adj_bf16 = adj.astype(jnp.bfloat16)
    blocks = adj.reshape(R, ni, tm, nk, tk)
    nz = (jnp.abs(blocks).sum(axis=(2, 4)) > 0.0)                  # [R, ni, nk]
    nz = jnp.transpose(nz, (1, 0, 2)).reshape(-1).astype(jnp.int32)  # [ni*R*nk]

    cost = pl.CostEstimate(
        flops=2 * R * N * N * Dout,
        transcendentals=0,
        bytes_accessed=R * N * N * 2 + R * N * Dout * 2 + 2 * N * Dout * 4,
    )

    # ---- Kernel 2: tiled aggregation -------------------------------------
    out = pl.pallas_call(
        _aggregate_kernel,
        out_shape=jax.ShapeDtypeStruct((N, Dout), jnp.float32),
        grid_spec=pltpu.PrefetchScalarGridSpec(
            num_scalar_prefetch=1,  # nonzero-tile table -> SMEM
            grid=(ni, R, nk),
            in_specs=[
                pl.BlockSpec((1, tm, tk), lambda i, r, k, nz: (r, i, k)),   # A tile
                pl.BlockSpec((1, tk, Dout), lambda i, r, k, nz: (r, k, 0)),  # HW tile
                pl.BlockSpec((tm, Dout), lambda i, r, k, nz: (i, 0)),        # SELF
            ],
            out_specs=pl.BlockSpec((tm, Dout), lambda i, r, k, nz: (i, 0)),
        ),
        compiler_params=pltpu.CompilerParams(
            dimension_semantics=("parallel", "arbitrary", "arbitrary")
        ),
        cost_estimate=cost,
    )(nz, adj_bf16, hw, self_msg)

    return out.astype(features.dtype)


def build_dense_adjacency(src, dst, etypes, norm, num_rels, num_nodes):
    """Edge list -> dense per-relation norm-weighted adjacency (glue, plain JAX)."""
    # TODO(synk): data-dependent scatter has no clean Pallas tiling; kept in XLA.
    adj = jnp.zeros((num_rels, num_nodes, num_nodes), dtype=jnp.float32)
    adj = adj.at[etypes, dst, src].add(norm)
    return adj


def rgcn_reference(adj, features, weights, w_self, bias):
    msgs = jnp.einsum("rvu,uf,rfo->vo", adj, features, weights)
    out = msgs + features @ w_self + bias[None, :]
    return jnp.maximum(out, 0.0)


if __name__ == "__main__":
    # Small, lane-dense synthetic graph / module config.
    num_nodes = 256
    in_dim = 128
    out_dim = 128
    num_rels = 4
    num_edges = 1024

    key = jax.random.PRNGKey(0)
    k_feat, k_w, k_ws, k_b, k_src, k_dst, k_et, k_nrm = jax.random.split(key, 8)

    features = jax.random.normal(k_feat, (num_nodes, in_dim), dtype=jnp.float32)

    # Deterministic parameter init (per-relation weight, self-loop weight, bias).
    weights = 0.05 * jax.random.normal(k_w, (num_rels, in_dim, out_dim), dtype=jnp.float32)
    w_self = 0.05 * jax.random.normal(k_ws, (in_dim, out_dim), dtype=jnp.float32)
    bias = 0.05 * jax.random.normal(k_b, (out_dim,), dtype=jnp.float32)

    # Synthetic graph: edge list with relation types and per-edge norms.
    src = jax.random.randint(k_src, (num_edges,), 0, num_nodes)
    dst = jax.random.randint(k_dst, (num_edges,), 0, num_nodes)
    etypes = jax.random.randint(k_et, (num_edges,), 0, num_rels)
    norm = jax.random.uniform(k_nrm, (num_edges,), dtype=jnp.float32)

    adj = build_dense_adjacency(src, dst, etypes, norm, num_rels, num_nodes)

    out = rgcn_forward(adj, features, weights, w_self, bias, tm=128, tk=128)
    out = jax.block_until_ready(out)

    ref = rgcn_reference(adj, features, weights, w_self, bias)
    assert out.shape == (num_nodes, out_dim)
    # bf16 adjacency / messages vs f32 reference -> loosened tolerance.
    assert jnp.allclose(out, ref, atol=5e-2, rtol=5e-2)

    print("KERNEL_OK")
</pallas_src>

<mosaic_0001>
module attributes {stable_mosaic.version = 11 : i64} {
  func.func @_transform_kernel(%arg0: i32, %arg1: i32, %arg2: memref<128x128xf32, #tpu.memory_space<vmem>>, %arg3: memref<1x128x128xf32, #tpu.memory_space<vmem>>, %arg4: memref<128x128xf32, #tpu.memory_space<vmem>>, %arg5: memref<1x128xf32, #tpu.memory_space<vmem>>, %arg6: memref<1x128x128xbf16, #tpu.memory_space<vmem>>, %arg7: memref<128x128xf32, #tpu.memory_space<vmem>>) attributes {dimension_semantics = [#tpu.dimension_semantics<parallel>, #tpu.dimension_semantics<arbitrary>], iteration_bounds = array<i64: 2, 4>, scalar_prefetch = 0 : i64, scratch_operands = 0 : i64, tpu.core_type = #tpu.core_type<tc>, window_params = [{transform_indices = @transform_0, window_bounds = array<i64: 128, 128>}, {transform_indices = @transform_1, window_bounds = array<i64: 1, 128, 128>}, {pipeline_mode = #tpu.pipeline_mode<synchronous>, transform_indices = @transform_2, window_bounds = array<i64: 128, 128>}, {pipeline_mode = #tpu.pipeline_mode<synchronous>, transform_indices = @transform_3, window_bounds = array<i64: 1, 128>}, {transform_indices = @transform_4, window_bounds = array<i64: 1, 128, 128>}, {transform_indices = @transform_5, window_bounds = array<i64: 128, 128>}]} {
    %c0 = arith.constant 0 : index
    %c0_0 = arith.constant 0 : index
    %0 = vector.load %arg2[%c0, %c0_0] : memref<128x128xf32, #tpu.memory_space<vmem>>, vector<128x128xf32>
    %c0_1 = arith.constant 0 : index
    %c0_2 = arith.constant 0 : index
    %c0_3 = arith.constant 0 : index
    %1 = vector.load %arg3[%c0_1, %c0_2, %c0_3] : memref<1x128x128xf32, #tpu.memory_space<vmem>>, vector<1x128x128xf32>
    %2 = vector.shape_cast %1 : vector<1x128x128xf32> to vector<128x128xf32>
    %cst = arith.constant dense<0.000000e+00> : vector<128x128xf32>
    %3 = tpu.matmul %0, %2, %cst {dimension_numbers = #tpu.dot_dimension_numbers<[1], [0], [0], [1], [0, 0, 1, 1], [], []>} : vector<128x128xf32>, vector<128x128xf32>, vector<128x128xf32> -> vector<128x128xf32>
    %4 = arith.truncf %3 : vector<128x128xf32> to vector<128x128xbf16>
    %c0_4 = arith.constant 0 : index
    %c0_5 = arith.constant 0 : index
    %c0_6 = arith.constant 0 : index
    %5 = vector.load %arg6[%c0_4, %c0_5, %c0_6] : memref<1x128x128xbf16, #tpu.memory_space<vmem>>, vector<1x128x128xbf16>
    %6 = vector.shape_cast %5 : vector<1x128x128xbf16> to vector<128x128xbf16>
    %7 = vector.shape_cast %4 : vector<128x128xbf16> to vector<1x128x128xbf16>
    tpu.vector_store %arg6[%c0_4, %c0_5, %c0_6], %7 {strides = array<i32>} : memref<1x128x128xbf16, #tpu.memory_space<vmem>>, vector<1x128x128xbf16>,
    %c0_i32 = arith.constant 0 : i32
    %8 = arith.cmpi eq, %arg1, %c0_i32 : i32
    %9 = arith.extui %8 : i1 to i32
    %c0_i32_7 = arith.constant 0 : i32
    %10 = arith.cmpi ne, %9, %c0_i32_7 : i32
    scf.if %10 {
      %c0_8 = arith.constant 0 : index
      %c0_9 = arith.constant 0 : index
      %11 = vector.load %arg2[%c0_8, %c0_9] : memref<128x128xf32, #tpu.memory_space<vmem>>, vector<128x128xf32>
      %c0_10 = arith.constant 0 : index
      %c0_11 = arith.constant 0 : index
      %12 = vector.load %arg4[%c0_10, %c0_11] : memref<128x128xf32, #tpu.memory_space<vmem>>, vector<128x128xf32>
      %cst_12 = arith.constant dense<0.000000e+00> : vector<128x128xf32>
      %13 = tpu.matmul %11, %12, %cst_12 {dimension_numbers = #tpu.dot_dimension_numbers<[1], [0], [0], [1], [0, 0, 1, 1], [], []>} : vector<128x128xf32>, vector<128x128xf32>, vector<128x128xf32> -> vector<128x128xf32>
      %c0_13 = arith.constant 0 : index
      %c0_14 = arith.constant 0 : index
      %14 = vector.load %arg5[%c0_13, %c0_14] : memref<1x128xf32, #tpu.memory_space<vmem>>, vector<1x128xf32>
      %15 = vector.broadcast %14 : vector<1x128xf32> to vector<128x128xf32>
      %16 = arith.addf %13, %15 : vector<128x128xf32>
      %c0_15 = arith.constant 0 : index
      %c0_16 = arith.constant 0 : index
      %17 = vector.load %arg7[%c0_15, %c0_16] : memref<128x128xf32, #tpu.memory_space<vmem>>, vector<128x128xf32>
      tpu.vector_store %arg7[%c0_15, %c0_16], %16 {strides = array<i32>} : memref<128x128xf32, #tpu.memory_space<vmem>>, vector<128x128xf32>,
    } else {
    }
    return
  }
  func.func @transform_0(%arg0: i32, %arg1: i32) -> (i32, i32) {
    %c0_i32 = arith.constant 0 : i32
    %c0_i32_0 = arith.constant 0 : i32
    return %arg0, %c0_i32 : i32, i32
  }
  func.func @transform_1(%arg0: i32, %arg1: i32) -> (i32, i32, i32) {
    %c0_i32 = arith.constant 0 : i32
    %c0_i32_0 = arith.constant 0 : i32
    %c0_i32_1 = arith.constant 0 : i32
    return %arg1, %c0_i32, %c0_i32_0 : i32, i32, i32
  }
  func.func @transform_2(%arg0: i32, %arg1: i32) -> (i32, i32) {
    %c0_i32 = arith.constant 0 : i32
    %c0_i32_0 = arith.constant 0 : i32
    %c0_i32_1 = arith.constant 0 : i32
    return %c0_i32, %c0_i32_0 : i32, i32
  }
  func.func @transform_3(%arg0: i32, %arg1: i32) -> (i32, i32) {
    %c0_i32 = arith.constant 0 : i32
    %c0_i32_0 = arith.constant 0 : i32
    %c0_i32_1 = arith.constant 0 : i32
    return %c0_i32, %c0_i32_0 : i32, i32
  }
  func.func @transform_4(%arg0: i32, %arg1: i32) -> (i32, i32, i32) {
    %c0_i32 = arith.constant 0 : i32
    %c0_i32_0 = arith.constant 0 : i32
    return %arg1, %arg0, %c0_i32 : i32, i32, i32
  }
  func.func @transform_5(%arg0: i32, %arg1: i32) -> (i32, i32) {
    %c0_i32 = arith.constant 0 : i32
    %c0_i32_0 = arith.constant 0 : i32
    return %arg0, %c0_i32 : i32, i32
  }
}

module attributes {stable_mosaic.version = 11 : i64} {
  func.func @_aggregate_kernel(%arg0: i32, %arg1: i32, %arg2: i32, %arg3: memref<16xi32, #tpu.memory_space<smem>>, %arg4: memref<1x128x128xbf16, #tpu.memory_space<vmem>>, %arg5: memref<1x128x128xbf16, #tpu.memory_space<vmem>>, %arg6: memref<128x128xf32, #tpu.memory_space<vmem>>, %arg7: memref<128x128xf32, #tpu.memory_space<vmem>>) attributes {dimension_semantics = [#tpu.dimension_semantics<parallel>, #tpu.dimension_semantics<arbitrary>, #tpu.dimension_semantics<arbitrary>], iteration_bounds = array<i64: 2, 4, 2>, scalar_prefetch = 1 : i64, scratch_operands = 0 : i64, tpu.core_type = #tpu.core_type<tc>, window_params = [{transform_indices = @transform_0, window_bounds = array<i64: 1, 128, 128>}, {transform_indices = @transform_1, window_bounds = array<i64: 1, 128, 128>}, {transform_indices = @transform_2, window_bounds = array<i64: 128, 128>}, {transform_indices = @transform_3, window_bounds = array<i64: 128, 128>}]} {
    %c0_i32 = arith.constant 0 : i32
    %0 = arith.cmpi eq, %arg1, %c0_i32 : i32
    %c0_i32_0 = arith.constant 0 : i32
    %1 = arith.cmpi eq, %arg2, %c0_i32_0 : i32
    %2 = arith.andi %0, %1 : i1
    %3 = arith.extui %2 : i1 to i32
    %c0_i32_1 = arith.constant 0 : i32
    %4 = arith.cmpi ne, %3, %c0_i32_1 : i32
    scf.if %4 {
      %c0 = arith.constant 0 : index
      %c0_5 = arith.constant 0 : index
      %19 = vector.load %arg6[%c0, %c0_5] : memref<128x128xf32, #tpu.memory_space<vmem>>, vector<128x128xf32>
      %c0_6 = arith.constant 0 : index
      %c0_7 = arith.constant 0 : index
      %20 = vector.load %arg7[%c0_6, %c0_7] : memref<128x128xf32, #tpu.memory_space<vmem>>, vector<128x128xf32>
      tpu.vector_store %arg7[%c0_6, %c0_7], %19 {strides = array<i32>} : memref<128x128xf32, #tpu.memory_space<vmem>>, vector<128x128xf32>,
    } else {
    }
    %c4_i32 = arith.constant 4 : i32
    %5 = arith.muli %arg0, %c4_i32 : i32
    %6 = arith.addi %5, %arg1 : i32
    %c2_i32 = arith.constant 2 : i32
    %7 = arith.muli %6, %c2_i32 : i32
    %8 = arith.addi %7, %arg2 : i32
    %9 = arith.index_cast %8 : i32 to index
    %10 = memref.load %arg3[%9] : memref<16xi32, #tpu.memory_space<smem>>
    %c0_i32_2 = arith.constant 0 : i32
    %11 = arith.cmpi sgt, %10, %c0_i32_2 : i32
    %12 = arith.extui %11 : i1 to i32
    %c0_i32_3 = arith.constant 0 : i32
    %13 = arith.cmpi ne, %12, %c0_i32_3 : i32
    scf.if %13 {
      %c0 = arith.constant 0 : index
      %c0_5 = arith.constant 0 : index
      %19 = vector.load %arg7[%c0, %c0_5] : memref<128x128xf32, #tpu.memory_space<vmem>>, vector<128x128xf32>
      %c0_6 = arith.constant 0 : index
      %c0_7 = arith.constant 0 : index
      %c0_8 = arith.constant 0 : index
      %20 = vector.load %arg4[%c0_6, %c0_7, %c0_8] : memref<1x128x128xbf16, #tpu.memory_space<vmem>>, vector<1x128x128xbf16>
      %21 = vector.shape_cast %20 : vector<1x128x128xbf16> to vector<128x128xbf16>
      %c0_9 = arith.constant 0 : index
      %c0_10 = arith.constant 0 : index
      %c0_11 = arith.constant 0 : index
      %22 = vector.load %arg5[%c0_9, %c0_10, %c0_11] : memref<1x128x128xbf16, #tpu.memory_space<vmem>>, vector<1x128x128xbf16>
      %23 = vector.shape_cast %22 : vector<1x128x128xbf16> to vector<128x128xbf16>
      %cst = arith.constant dense<0.000000e+00> : vector<128x128xf32>
      %24 = tpu.matmul %21, %23, %cst {dimension_numbers = #tpu.dot_dimension_numbers<[1], [0], [0], [1], [0, 0, 1, 1], [], []>} : vector<128x128xbf16>, vector<128x128xbf16>, vector<128x128xf32> -> vector<128x128xf32>
      %25 = arith.addf %19, %24 : vector<128x128xf32>
      %c0_12 = arith.constant 0 : index
      %c0_13 = arith.constant 0 : index
      %26 = vector.load %arg7[%c0_12, %c0_13] : memref<128x128xf32, #tpu.memory_space<vmem>>, vector<128x128xf32>
      tpu.vector_store %arg7[%c0_12, %c0_13], %25 {strides = array<i32>} : memref<128x128xf32, #tpu.memory_space<vmem>>, vector<128x128xf32>,
    } else {
    }
    %c3_i32 = arith.constant 3 : i32
    %14 = arith.cmpi eq, %arg1, %c3_i32 : i32
    %c1_i32 = arith.constant 1 : i32
    %15 = arith.cmpi eq, %arg2, %c1_i32 : i32
    %16 = arith.andi %14, %15 : i1
    %17 = arith.extui %16 : i1 to i32
    %c0_i32_4 = arith.constant 0 : i32
    %18 = arith.cmpi ne, %17, %c0_i32_4 : i32
    scf.if %18 {
      %c0 = arith.constant 0 : index
      %c0_5 = arith.constant 0 : index
      %19 = vector.load %arg7[%c0, %c0_5] : memref<128x128xf32, #tpu.memory_space<vmem>>, vector<128x128xf32>
      %cst = arith.constant 0.000000e+00 : f32
      %20 = vector.broadcast %cst : f32 to vector<128x128xf32>
      %21 = arith.maximumf %19, %20 : vector<128x128xf32>
      %c0_6 = arith.constant 0 : index
      %c0_7 = arith.constant 0 : index
      %22 = vector.load %arg7[%c0_6, %c0_7] : memref<128x128xf32, #tpu.memory_space<vmem>>, vector<128x128xf32>
      tpu.vector_store %arg7[%c0_6, %c0_7], %21 {strides = array<i32>} : memref<128x128xf32, #tpu.memory_space<vmem>>, vector<128x128xf32>,
    } else {
    }
    return
  }
  func.func @transform_0(%arg0: i32, %arg1: i32, %arg2: i32, %arg3: memref<16xi32, #tpu.memory_space<smem>>) -> (i32, i32, i32) {
    %c0_i32 = arith.constant 0 : i32
    return %arg1, %arg0, %arg2 : i32, i32, i32
  }
  func.func @transform_1(%arg0: i32, %arg1: i32, %arg2: i32, %arg3: memref<16xi32, #tpu.memory_space<smem>>) -> (i32, i32, i32) {
    %c0_i32 = arith.constant 0 : i32
    %c0_i32_0 = arith.constant 0 : i32
    return %arg1, %arg2, %c0_i32 : i32, i32, i32
  }
  func.func @transform_2(%arg0: i32, %arg1: i32, %arg2: i32, %arg3: memref<16xi32, #tpu.memory_space<smem>>) -> (i32, i32) {
    %c0_i32 = arith.constant 0 : i32
    %c0_i32_0 = arith.constant 0 : i32
    return %arg0, %c0_i32 : i32, i32
  }
  func.func @transform_3(%arg0: i32, %arg1: i32, %arg2: i32, %arg3: memref<16xi32, #tpu.memory_space<smem>>) -> (i32, i32) {
    %c0_i32 = arith.constant 0 : i32
    %c0_i32_0 = arith.constant 0 : i32
    return %arg0, %c0_i32 : i32, i32
  }
}

</mosaic_0001>

<bundles_post_ra>
// kernel: rgcn_forward.2
= control target key start
LH: loop header
LB: loop body
LE: loop exit
PB: predicated region body
PF: predicated region fallthrough
CT: control target
= control target key end

     0   :  { %s1355_s18 = smov 0   ;;  %s1357_s19 = smov 0   ;;  %s1546_s0 = inlined_call_operand.vmem [shape: f32[256,128], index: 0, kind: input, shape index: {}]   ;;  %s1547_s1 = inlined_call_operand.vmem [shape: f32[4,128,128], index: 1, kind: input, shape index: {}]   ;;  %s1548_s2 = inlined_call_operand.vmem [shape: f32[128,128], index: 2, kind: input, shape index: {}]   ;;  %s1549_s3 = inlined_call_operand.vmem [shape: f32[1,128], index: 3, kind: input, shape index: {}]   ;;  %s1550_s4 = inlined_call_operand.vmem [shape: bf16[4,256,128], index: 4, kind: output, shape index: {0}]   ;;  %s1551_s5 = inlined_call_operand.vmem [shape: f32[256,128], index: 5, kind: output, shape index: {1}]  }
   0x1   :  { %s1359_s20 = smov 0   ;;  %s1361_s21 = smov 0  }
   0x2   :  { %s1363_s22 = smov 0  }
   0x3 LB: > { %s25_s23 = sadd.s32 1, %s1315_s20  ;;  %s28_s24 = sadd.s32 1, %s1319_s21  ;;  %s1323_s22 = sphi %s1363_s22, %s16_s22   ;;  %s1319_s21 = sphi %s1361_s21, %s1555_s21   ;;  %s1315_s20 = sphi %s1359_s20, %s1554_s20   ;;  %s1311_s19 = sphi %s1357_s19, %s1553_s19   ;;  %s1307_s18 = sphi %s1355_s18, %s1552_s18  }
   0x4   : > { %p26_p0 = scmp.ge.s32.totalorder %s25_s23, 4  ;;  %p879_p1 = scmp.ge.s32.totalorder %s1323_s22, 1 }
   0x5   : > { %p215_p2 = scmp.lt.s32.totalorder %s1323_s22, 9 }
   0x6   : > { %s1557_s23 = smov (%p26_p0, %s25_s23), 0  ;;  %s1559_s24 = smov (!%p26_p0, %s28_s24), %s1319_s21 }
   0x7   : > { %p216_p3 = pnand %p879_p1, %p215_p2  ;;  %p30_p4 = scmp.ge.s32.totalorder %s1559_s24, 2 }
   0x8   : > { %p263_p5 = scmp.lt.s32.totalorder (!%p216_p3), %s1307_s18, 3  ;;  %s880_s25 = sshll.u32 (!%p216_p3), %s1311_s19, 4 }
   0x9   : > { %s1561_s24 = smov (%p30_p4, %s1559_s24), 0  ;;  %219 = sbr.rel (%p216_p3) target bundleno = 495 (0x1ef), region = 36 }
   0xa   : > { %p258_p6 = scmp.lt.s32.totalorder (!%p216_p3), %s880_s25, 31  ;;  %p905_p7 = scmp.ne.s32.totalorder (!%p216_p3), %s1307_s18, 0 }
  0x10   : > { %s1389_s26 = scalar_select %p263_p5, %s1307_s18, 3 }
  0x11   : > { %s1563_s25 = smov (!%p258_p6, %s880_s25), 31 }
  0x12   : > { %s909_s27 = sshll.u32 %s1389_s26, 7  ;;  %s881_s6 = sshll.u32 %s1563_s25, 3 }
  0x13   : > { %s1397_s30 = scalar_lea.vmem %s1547_s1, %s909_s27  ;;  %s1406_s9 = scalar_lea.vmem %s1551_s5, %s881_s6 }
  0x14   : > { %v300_v0 = vld [vmem:[%s1397_s30] sm:$0xff]  ;;  %v301_v1 = vld [vmem:[%s1397_s30 + $0x8] sm:$0xff]  ;;  %v302_v2 = vld [vmem:[%s1397_s30 + $0x10] sm:$0xff]  ;;  %s1414_s12 = scalar_lea.vmem %s1546_s0, %s881_s6  ;;  %s885_s13 = sshll.u32 %s1389_s26, 5 }
  0x15   : > { %v1149_v3 = vpack.c.bf16 %v301_v1, %v300_v0  ;;  %v303_v4 = vld [vmem:[%s1397_s30 + $0x18] sm:$0xff]  ;;  %v304_v6 = vld [vmem:[%s1397_s30 + $0x20] sm:$0xff]  ;;  %v305_v7 = vld [vmem:[%s1397_s30 + $0x28] sm:$0xff]  ;;  %s274_s14 = sadd.s32 %s885_s13, %s1563_s25 }
  0x16   : > { %v1153_v5 = vpack.c.bf16 %v303_v4, %v302_v2  ;;  %v1157_v8 = vpack.c.bf16 %v305_v7, %v304_v6  ;;  %v284_v9 = vld [vmem:[%s1414_s12] sm:$0xff]  ;;  %v306_v11 = vld [vmem:[%s1397_s30 + $0x30] sm:$0xff]  ;;  %v307_v12 = vld [vmem:[%s1397_s30 + $0x38] sm:$0xff]  ;;  %s886_s15 = sshll.u32 %s274_s14, 2 }
  0x17   : > { %1150 = vmatprep.subr.bf16.mxu0 %v1149_v3  ;;  %1213 = vmatprep.subr.bf16.mxu1 %v1149_v3  ;;  %v292_v10 = vld [vmem:[%s1414_s12 + $0x40] sm:$0xff]  ;;  %v1161_v13 = vpack.c.bf16 %v307_v12, %v306_v11  ;;  %v309_v15 = vld [vmem:[%s1397_s30 + $0x48] sm:$0xff]  ;;  %v310_v17 = vld [vmem:[%s1397_s30 + $0x50] sm:$0xff]  ;;  %s276_s19 = scalar_lea.vmem %s1550_s4, %s886_s15 }
  0x18   : > { %1152 = vmatpush3.bf16.msra.mxu0 %v1149_v3  ;;  %1221 = vmatpush3.bf16.msra.mxu1 %v1149_v3  ;;  %v308_v14 = vld [vmem:[%s1397_s30 + $0x40] sm:$0xff]  ;;  %v311_v18 = vld [vmem:[%s1397_s30 + $0x58] sm:$0xff]  ;;  %v313_v21 = vld [vmem:[%s1397_s30 + $0x68] sm:$0xff] }
  0x19   : > { %1154 = vmatprep.subr.bf16.mxu0 %v1153_v5  ;;  %1214 = vmatprep.subr.bf16.mxu1 %v1153_v5  ;;  %v1165_v16 = vpack.c.bf16 %v309_v15, %v308_v14  ;;  %v1169_v19 = vpack.c.bf16 %v311_v18, %v310_v17  ;;  %v312_v20 = vld [vmem:[%s1397_s30 + $0x60] sm:$0xff]  ;;  %v314_v23 = vld [vmem:[%s1397_s30 + $0x70] sm:$0xff]  ;;  %v315_v24 = vld [vmem:[%s1397_s30 + $0x78] sm:$0xff] }
  0x1a   : > { %1069 = vmatprep.mubr.f32.mxu0 %v284_v9  ;;  %1081 = vmatprep.mubr.f32.mxu1 %v292_v10  ;;  %v1173_v22 = vpack.c.bf16 %v313_v21, %v312_v20  ;;  %v1177_v25 = vpack.c.bf16 %v315_v24, %v314_v23  ;;  %v285_v26 = vld [vmem:[%s1414_s12 + $0x8] sm:$0xff]  ;;  %v286_v28 = vld [vmem:[%s1414_s12 + $0x10] sm:$0xff]  ;;  %v287_v30 = vld [vmem:[%s1414_s12 + $0x18] sm:$0xff] }
  0x1b   : > { %v293_v27 = vld [vmem:[%s1414_s12 + $0x48] sm:$0xff]  ;;  %v294_v29 = vld [vmem:[%s1414_s12 + $0x50] sm:$0xff]  ;;  %v295_v31 = vld [vmem:[%s1414_s12 + $0x58] sm:$0xff] }
  0x1c   : > { %1156 = vmatpush3.bf16.msra.mxu0 %v1153_v5  ;;  %1222 = vmatpush3.bf16.msra.mxu1 %v1153_v5  ;;  %v288_v32 = vld [vmem:[%s1414_s12 + $0x20] sm:$0xff]  ;;  %v289_v34 = vld [vmem:[%s1414_s12 + $0x28] sm:$0xff]  ;;  %v290_v36 = vld [vmem:[%s1414_s12 + $0x30] sm:$0xff] }
  0x1d   : > { %1158 = vmatprep.subr.bf16.mxu0 %v1157_v8  ;;  %1215 = vmatprep.subr.bf16.mxu1 %v1157_v8  ;;  %v296_v33 = vld [vmem:[%s1414_s12 + $0x60] sm:$0xff]  ;;  %v297_v35 = vld [vmem:[%s1414_s12 + $0x68] sm:$0xff]  ;;  %v298_v37 = vld [vmem:[%s1414_s12 + $0x70] sm:$0xff] }
  0x1e   : > { %v291_v38 = vld [vmem:[%s1414_s12 + $0x38] sm:$0xff]  ;;  %v561_v0 = vld [vmem:[%s1548_s2] sm:$0xff] (!%p905_p7)  ;;  %v562_v1 = vld [vmem:[%s1548_s2 + $0x8] sm:$0xff] (!%p905_p7) }
  0x1f   : > { %v299_v39 = vld [vmem:[%s1414_s12 + $0x78] sm:$0xff]  ;;  %v563_v2 = vld [vmem:[%s1548_s2 + $0x10] sm:$0xff] (!%p905_p7)  ;;  %v1181_v3 = vpack.c.bf16 (!%p905_p7), %v562_v1, %v561_v0  ;;  %v565_v6 = vld [vmem:[%s1548_s2 + $0x20] sm:$0xff] (!%p905_p7) }
  0x20   : > { %1160 = vmatpush3.bf16.msra.mxu0 %v1157_v8  ;;  %1223 = vmatpush3.bf16.msra.mxu1 %v1157_v8  ;;  %v564_v4 = vld [vmem:[%s1548_s2 + $0x18] sm:$0xff] (!%p905_p7)  ;;  %v566_v7 = vld [vmem:[%s1548_s2 + $0x28] sm:$0xff] (!%p905_p7)  ;;  %v545_v9 = vld [vmem:[%s1414_s12] sm:$0xff] (!%p905_p7) }
  0x21   : > { %1162 = vmatprep.subr.bf16.mxu0 %v1161_v13  ;;  %1216 = vmatprep.subr.bf16.mxu1 %v1161_v13  ;;  %v1185_v5 = vpack.c.bf16 (!%p905_p7), %v564_v4, %v563_v2  ;;  %v1189_v8 = vpack.c.bf16 (!%p905_p7), %v566_v7, %v565_v6  ;;  %v553_v10 = vld [vmem:[%s1414_s12 + $0x40] sm:$0xff] (!%p905_p7)  ;;  %v567_v11 = vld [vmem:[%s1548_s2 + $0x30] sm:$0xff] (!%p905_p7)  ;;  %v568_v12 = vld [vmem:[%s1548_s2 + $0x38] sm:$0xff] (!%p905_p7) }
  0x22   : > { %v569_v14 = vld [vmem:[%s1548_s2 + $0x40] sm:$0xff] (!%p905_p7)  ;;  %v570_v15 = vld [vmem:[%s1548_s2 + $0x48] sm:$0xff] (!%p905_p7)  ;;  %v571_v17 = vld [vmem:[%s1548_s2 + $0x50] sm:$0xff] (!%p905_p7) }
  0x23   : > { %v572_v18 = vld [vmem:[%s1548_s2 + $0x58] sm:$0xff] (!%p905_p7)  ;;  %v573_v20 = vld [vmem:[%s1548_s2 + $0x60] sm:$0xff] (!%p905_p7)  ;;  %v574_v21 = vld [vmem:[%s1548_s2 + $0x68] sm:$0xff] (!%p905_p7) }
  0x24   : > { %1164 = vmatpush3.bf16.msra.mxu0 %v1161_v13  ;;  %1224 = vmatpush3.bf16.msra.mxu1 %v1161_v13  ;;  %v1193_v13 = vpack.c.bf16 (!%p905_p7), %v568_v12, %v567_v11  ;;  %v575_v23 = vld [vmem:[%s1548_s2 + $0x70] sm:$0xff] (!%p905_p7)  ;;  %v576_v24 = vld [vmem:[%s1548_s2 + $0x78] sm:$0xff] (!%p905_p7) }
  0x25   : > { %1166 = vmatprep.subr.bf16.mxu0 %v1165_v16  ;;  %1217 = vmatprep.subr.bf16.mxu1 %v1165_v16 }
  0x28   : > { %1168 = vmatpush3.bf16.msra.mxu0 %v1165_v16  ;;  %1225 = vmatpush3.bf16.msra.mxu1 %v1165_v16  ;;  %v1197_v16 = vpack.c.bf16 (!%p905_p7), %v570_v15, %v569_v14 }
  0x29   : > { %1170 = vmatprep.subr.bf16.mxu0 %v1169_v19  ;;  %1218 = vmatprep.subr.bf16.mxu1 %v1169_v19 }
  0x2c   : > { %1172 = vmatpush3.bf16.msra.mxu0 %v1169_v19  ;;  %1226 = vmatpush3.bf16.msra.mxu1 %v1169_v19  ;;  %v1201_v19 = vpack.c.bf16 (!%p905_p7), %v572_v18, %v571_v17 }
  0x2d   : > { %1174 = vmatprep.subr.bf16.mxu0 %v1173_v22  ;;  %1219 = vmatprep.subr.bf16.mxu1 %v1173_v22 }
  0x30   : > { %1176 = vmatpush3.bf16.msra.mxu0 %v1173_v22  ;;  %1227 = vmatpush3.bf16.msra.mxu1 %v1173_v22  ;;  %v1205_v22 = vpack.c.bf16 (!%p905_p7), %v574_v21, %v573_v20 }
  0x31   : > { %1178 = vmatprep.subr.bf16.mxu0 %v1177_v25  ;;  %1220 = vmatprep.subr.bf16.mxu1 %v1177_v25 }
  0x34   : > { %1180 = vmatpush3.bf16.msra.mxu0 %v1177_v25  ;;  %1228 = vmatpush3.bf16.msra.mxu1 %v1177_v25  ;;  %v1209_v25 = vpack.c.bf16 (!%p905_p7), %v576_v24, %v575_v23 }
  0x35   : > { %1182 = vmatprep.subr.bf16.mxu0 (!%p905_p7), %v1181_v3  ;;  %1229 = vmatprep.subr.bf16.mxu1 (!%p905_p7), %v1181_v3 }
  0x37   : > { %1070 = vmatmul.mubr.f32.vlgmr.msra.gmra.mrb[0].mxu0 %v285_v26  ;;  %1082 = vmatmul.mubr.f32.vlgmr.msra.gmra.mrb[0].mxu1 %v293_v27  ;;  %v546_v26 = vld [vmem:[%s1414_s12 + $0x8] sm:$0xff] (!%p905_p7) }
  0x38   : > { %1072 = vmatprep.mubr.f32.mxu0 %v286_v28  ;;  %1084 = vmatprep.mubr.f32.mxu1 %v294_v29  ;;  %v554_v27 = vld [vmem:[%s1414_s12 + $0x48] sm:$0xff] (!%p905_p7)  ;;  %v547_v28 = vld [vmem:[%s1414_s12 + $0x10] sm:$0xff] (!%p905_p7) }
  0x39   : > { %1184 = vmatpush3.bf16.msra.mxu0 (!%p905_p7), %v1181_v3  ;;  %1237 = vmatpush3.bf16.msra.mxu1 (!%p905_p7), %v1181_v3  ;;  %v555_v29 = vld [vmem:[%s1414_s12 + $0x50] sm:$0xff] (!%p905_p7) }
  0x3a   : > { %1186 = vmatprep.subr.bf16.mxu0 (!%p905_p7), %v1185_v5  ;;  %1230 = vmatprep.subr.bf16.mxu1 (!%p905_p7), %v1185_v5 }
  0x3b   : > { %1073 = vmatmul.mubr.f32.gmra.mrb[2].mxu0 %v287_v30  ;;  %1085 = vmatmul.mubr.f32.gmra.mrb[2].mxu1 %v295_v31  ;;  %v548_v30 = vld [vmem:[%s1414_s12 + $0x18] sm:$0xff] (!%p905_p7) }
  0x3c   : > { %1075 = vmatprep.mubr.f32.mxu0 %v288_v32  ;;  %1087 = vmatprep.mubr.f32.mxu1 %v296_v33  ;;  %v556_v31 = vld [vmem:[%s1414_s12 + $0x58] sm:$0xff] (!%p905_p7)  ;;  %v549_v32 = vld [vmem:[%s1414_s12 + $0x20] sm:$0xff] (!%p905_p7) }
  0x3d   : > { %1188 = vmatpush3.bf16.msra.mxu0 (!%p905_p7), %v1185_v5  ;;  %1238 = vmatpush3.bf16.msra.mxu1 (!%p905_p7), %v1185_v5  ;;  %v557_v33 = vld [vmem:[%s1414_s12 + $0x60] sm:$0xff] (!%p905_p7) }
  0x3e   : > { %1190 = vmatprep.subr.bf16.mxu0 (!%p905_p7), %v1189_v8  ;;  %1231 = vmatprep.subr.bf16.mxu1 (!%p905_p7), %v1189_v8 }
  0x3f   : > { %1076 = vmatmul.mubr.f32.gmra.mrb[4].mxu0 %v289_v34  ;;  %1088 = vmatmul.mubr.f32.gmra.mrb[4].mxu1 %v297_v35  ;;  %v550_v34 = vld [vmem:[%s1414_s12 + $0x28] sm:$0xff] (!%p905_p7) }
  0x40   : > { %1078 = vmatprep.mubr.f32.mxu0 %v290_v36  ;;  %1090 = vmatprep.mubr.f32.mxu1 %v298_v37  ;;  %v558_v35 = vld [vmem:[%s1414_s12 + $0x68] sm:$0xff] (!%p905_p7)  ;;  %v551_v36 = vld [vmem:[%s1414_s12 + $0x30] sm:$0xff] (!%p905_p7) }
  0x41   : > { %1192 = vmatpush3.bf16.msra.mxu0 (!%p905_p7), %v1189_v8  ;;  %1239 = vmatpush3.bf16.msra.mxu1 (!%p905_p7), %v1189_v8  ;;  %v559_v37 = vld [vmem:[%s1414_s12 + $0x70] sm:$0xff] (!%p905_p7) }
  0x42   : > { %1194 = vmatprep.subr.bf16.mxu0 (!%p905_p7), %v1193_v13  ;;  %1232 = vmatprep.subr.bf16.mxu1 (!%p905_p7), %v1193_v13 }
  0x43   : > { %1079 = vmatmul.mubr.f32.gmra.mrb[6].mxu0 %v291_v38  ;;  %1091 = vmatmul.mubr.f32.gmra.mrb[6].mxu1 %v299_v39  ;;  %v552_v38 = vld [vmem:[%s1414_s12 + $0x38] sm:$0xff] (!%p905_p7) }
  0x44   : > { %1125 = vmatprep.mubr.f32.mxu0 (!%p905_p7), %v545_v9  ;;  %1137 = vmatprep.mubr.f32.mxu1 (!%p905_p7), %v553_v10  ;;  %v560_v39 = vld [vmem:[%s1414_s12 + $0x78] sm:$0xff] (!%p905_p7) }
  0x45   : > { %1196 = vmatpush3.bf16.msra.mxu0 (!%p905_p7), %v1193_v13  ;;  %1240 = vmatpush3.bf16.msra.mxu1 (!%p905_p7), %v1193_v13 }
  0x46   : > { %1198 = vmatprep.subr.bf16.mxu0 (!%p905_p7), %v1197_v16  ;;  %1233 = vmatprep.subr.bf16.mxu1 (!%p905_p7), %v1197_v16 }
  0x49   : > { %1200 = vmatpush3.bf16.msra.mxu0 (!%p905_p7), %v1197_v16  ;;  %1241 = vmatpush3.bf16.msra.mxu1 (!%p905_p7), %v1197_v16 }
  0x4a   : > { %1202 = vmatprep.subr.bf16.mxu0 (!%p905_p7), %v1201_v19  ;;  %1234 = vmatprep.subr.bf16.mxu1 (!%p905_p7), %v1201_v19 }
  0x4d   : > { %1204 = vmatpush3.bf16.msra.mxu0 (!%p905_p7), %v1201_v19  ;;  %1242 = vmatpush3.bf16.msra.mxu1 (!%p905_p7), %v1201_v19 }
  0x4e   : > { %1206 = vmatprep.subr.bf16.mxu0 (!%p905_p7), %v1205_v22  ;;  %1235 = vmatprep.subr.bf16.mxu1 (!%p905_p7), %v1205_v22 }
  0x51   : > { %1208 = vmatpush3.bf16.msra.mxu0 (!%p905_p7), %v1205_v22  ;;  %1243 = vmatpush3.bf16.msra.mxu1 (!%p905_p7), %v1205_v22 }
  0x52   : > { %1210 = vmatprep.subr.bf16.mxu0 (!%p905_p7), %v1209_v25  ;;  %1236 = vmatprep.subr.bf16.mxu1 (!%p905_p7), %v1209_v25 }
  0x55   : > { %1212 = vmatpush3.bf16.msra.mxu0 (!%p905_p7), %v1209_v25  ;;  %1244 = vmatpush3.bf16.msra.mxu1 (!%p905_p7), %v1209_v25 }
 0x10a   : > { %v1071_v40 = vpop.f32.mrb[0].mxu0  ;;  %v1083_v41 = vpop.f32.mrb[0].mxu1 }
 0x10b   : > { %v382_v42 = vpop.f32.mrb[1].mxu0  ;;  %v422_v43 = vpop.f32.mrb[1].mxu1  ;;  %1126 = vmatmul.mubr.f32.vlgmr.msra.gmra.mrb[0].mxu0 (!%p905_p7), %v546_v26  ;;  %1138 = vmatmul.mubr.f32.vlgmr.msra.gmra.mrb[0].mxu1 (!%p905_p7), %v554_v27 }
 0x10c   : > { %v929_v44 = vpack.c.bf16 %v1071_v40, %v382_v42  ;;  %v949_v45 = vpack.c.bf16 %v1083_v41, %v422_v43  ;;  %1128 = vmatprep.mubr.f32.mxu0 (!%p905_p7), %v547_v28  ;;  %1140 = vmatprep.mubr.f32.mxu1 (!%p905_p7), %v555_v29  ;;  %v906_v40 = vld [vmem:[%s1549_s3] ss:$0 sm:$0xff] (!%p905_p7) }
 0x10e   : > { %930 = vst [vmem:[%s276_s19] sm:$0xff] %v929_v44   ;;  %969 = vst [vmem:[%s276_s19 + $0x20] sm:$0xff] %v949_v45   ;;  %v1074_v46 = vpop.f32.mrb[2].mxu0  ;;  %v1086_v47 = vpop.f32.mrb[2].mxu1 }
 0x10f   : > { %v392_v48 = vpop.f32.mrb[3].mxu0  ;;  %v432_v49 = vpop.f32.mrb[3].mxu1  ;;  %1129 = vmatmul.mubr.f32.gmra.mrb[2].mxu0 (!%p905_p7), %v548_v30  ;;  %1141 = vmatmul.mubr.f32.gmra.mrb[2].mxu1 (!%p905_p7), %v556_v31 }
 0x110   : > { %v934_v50 = vpack.c.bf16 %v1074_v46, %v392_v48  ;;  %v954_v51 = vpack.c.bf16 %v1086_v47, %v432_v49  ;;  %1131 = vmatprep.mubr.f32.mxu0 (!%p905_p7), %v549_v32  ;;  %1143 = vmatprep.mubr.f32.mxu1 (!%p905_p7), %v557_v33 }
 0x112   : > { %966 = vst [vmem:[%s276_s19 + $0x8] sm:$0xff] %v934_v50   ;;  %970 = vst [vmem:[%s276_s19 + $0x28] sm:$0xff] %v954_v51   ;;  %v1077_v52 = vpop.f32.mrb[4].mxu0  ;;  %v1089_v53 = vpop.f32.mrb[4].mxu1 }
 0x113   : > { %v402_v54 = vpop.f32.mrb[5].mxu0  ;;  %v442_v55 = vpop.f32.mrb[5].mxu1  ;;  %1132 = vmatmul.mubr.f32.gmra.mrb[4].mxu0 (!%p905_p7), %v550_v34  ;;  %1144 = vmatmul.mubr.f32.gmra.mrb[4].mxu1 (!%p905_p7), %v558_v35 }
 0x114   : > { %v939_v56 = vpack.c.bf16 %v1077_v52, %v402_v54  ;;  %v959_v57 = vpack.c.bf16 %v1089_v53, %v442_v55  ;;  %544 = sbr.rel (%p905_p7) target bundleno = 495 (0x1ef), region = 40  ;;  %1134 = vmatprep.mubr.f32.mxu0 (!%p905_p7), %v551_v36  ;;  %1146 = vmatprep.mubr.f32.mxu1 (!%p905_p7), %v559_v37 }
 0x116   : > { %967 = vst [vmem:[%s276_s19 + $0x10] sm:$0xff] %v939_v56   ;;  %971 = vst [vmem:[%s276_s19 + $0x30] sm:$0xff] %v959_v57   ;;  %v1080_v58 = vpop.f32.mrb[6].mxu0  ;;  %v1092_v59 = vpop.f32.mrb[6].mxu1 }
 0x117   : > { %v412_v60 = vpop.f32.mrb[7].mxu0  ;;  %v452_v61 = vpop.f32.mrb[7].mxu1  ;;  %1135 = vmatmul.mubr.f32.gmra.mrb[6].mxu0 (!%p905_p7), %v552_v38  ;;  %1147 = vmatmul.mubr.f32.gmra.mrb[6].mxu1 (!%p905_p7), %v560_v39 }
 0x118   : > { %v944_v62 = vpack.c.bf16 %v1080_v58, %v412_v60  ;;  %v964_v63 = vpack.c.bf16 %v1092_v59, %v452_v61 }
 0x11a   : > { %968 = vst [vmem:[%s276_s19 + $0x18] sm:$0xff] %v944_v62   ;;  %972 = vst [vmem:[%s276_s19 + $0x38] sm:$0xff] %v964_v63  }
 0x1de   : > { %v1127_v41 = vpop.f32.mrb[0].mxu0  ;;  %v1139_v42 = vpop.f32.mrb[0].mxu1 }
 0x1df   : > { %v656_v43 = vadd.f32 %v1127_v41, %v906_v40  ;;  %v696_v44 = vadd.f32 %v1139_v42, %v906_v40  ;;  %v650_v45 = vpop.f32.mrb[1].mxu0  ;;  %v690_v46 = vpop.f32.mrb[1].mxu1 }
 0x1e0   : > { %v651_v47 = vadd.f32 %v906_v40, %v650_v45  ;;  %v691_v48 = vadd.f32 %v906_v40, %v690_v46 }
 0x1e1   : > { %730 = vst [vmem:[%s1406_s9 + $0x8] sm:$0xff] %v656_v43  ;;  %738 = vst [vmem:[%s1406_s9 + $0x48] sm:$0xff] %v696_v44 }
 0x1e2   : > { %729 = vst [vmem:[%s1406_s9] sm:$0xff] %v651_v47  ;;  %737 = vst [vmem:[%s1406_s9 + $0x40] sm:$0xff] %v691_v48  ;;  %v1130_v49 = vpop.f32.mrb[2].mxu0  ;;  %v1142_v50 = vpop.f32.mrb[2].mxu1 }
 0x1e3   : > { %v666_v51 = vadd.f32 %v1130_v49, %v906_v40  ;;  %v706_v52 = vadd.f32 %v1142_v50, %v906_v40  ;;  %v660_v53 = vpop.f32.mrb[3].mxu0  ;;  %v700_v54 = vpop.f32.mrb[3].mxu1 }
 0x1e4   : > { %v661_v55 = vadd.f32 %v906_v40, %v660_v53  ;;  %v701_v56 = vadd.f32 %v906_v40, %v700_v54 }
 0x1e5   : > { %732 = vst [vmem:[%s1406_s9 + $0x18] sm:$0xff] %v666_v51  ;;  %740 = vst [vmem:[%s1406_s9 + $0x58] sm:$0xff] %v706_v52 }
 0x1e6   : > { %731 = vst [vmem:[%s1406_s9 + $0x10] sm:$0xff] %v661_v55  ;;  %739 = vst [vmem:[%s1406_s9 + $0x50] sm:$0xff] %v701_v56  ;;  %v1133_v57 = vpop.f32.mrb[4].mxu0  ;;  %v1145_v58 = vpop.f32.mrb[4].mxu1 }
 0x1e7   : > { %v676_v59 = vadd.f32 %v1133_v57, %v906_v40  ;;  %v716_v60 = vadd.f32 %v1145_v58, %v906_v40  ;;  %v670_v61 = vpop.f32.mrb[5].mxu0  ;;  %v710_v62 = vpop.f32.mrb[5].mxu1 }
 0x1e8   : > { %v671_v63 = vadd.f32 %v906_v40, %v670_v61  ;;  %v711_v0 = vadd.f32 %v906_v40, %v710_v62 }
 0x1e9   : > { %734 = vst [vmem:[%s1406_s9 + $0x28] sm:$0xff] %v676_v59  ;;  %742 = vst [vmem:[%s1406_s9 + $0x68] sm:$0xff] %v716_v60 }
 0x1ea   : > { %733 = vst [vmem:[%s1406_s9 + $0x20] sm:$0xff] %v671_v63  ;;  %741 = vst [vmem:[%s1406_s9 + $0x60] sm:$0xff] %v711_v0  ;;  %v1136_v1 = vpop.f32.mrb[6].mxu0  ;;  %v1148_v2 = vpop.f32.mrb[6].mxu1 }
 0x1eb   : > { %v686_v3 = vadd.f32 %v1136_v1, %v906_v40  ;;  %v726_v4 = vadd.f32 %v1148_v2, %v906_v40  ;;  %v680_v5 = vpop.f32.mrb[7].mxu0  ;;  %v720_v6 = vpop.f32.mrb[7].mxu1 }
 0x1ec   : > { %v681_v7 = vadd.f32 %v906_v40, %v680_v5  ;;  %v721_v8 = vadd.f32 %v906_v40, %v720_v6 }
 0x1ed   : > { %736 = vst [vmem:[%s1406_s9 + $0x38] sm:$0xff] %v686_v3  ;;  %744 = vst [vmem:[%s1406_s9 + $0x78] sm:$0xff] %v726_v4 }
 0x1ee   : > { %735 = vst [vmem:[%s1406_s9 + $0x30] sm:$0xff] %v681_v7  ;;  %743 = vst [vmem:[%s1406_s9 + $0x70] sm:$0xff] %v721_v8 }
 0x1ef PF: > { %s16_s22 = sadd.s32 1, %s1323_s22   ;;  %s1552_s18 = smov %s1315_s20 }
 0x1f0   : > { %p13_p8 = scmp.ge.s32.totalorder %s16_s22, 10   ;;  %s1553_s19 = smov %s1319_s21 }
 0x1f1   : > { %s1554_s20 = smov %s1557_s23  ;;  %s1555_s21 = smov %s1561_s24 }
 0x1f2   :  { %15 = sbr.rel (!%p13_p8) target bundleno = 3 (0x3), region = 85 }

// kernel: rgcn_forward.3
= control target key start
LH: loop header
LB: loop body
LE: loop exit
PB: predicated region body
PF: predicated region fallthrough
CT: control target
= control target key end

     0   :  { %s1628_s0 = inlined_call_operand.vmem [shape: s32[16], index: 0, kind: input, shape index: {}]   ;;  %s1629_s1 = inlined_call_operand.vmem [shape: bf16[4,256,256], index: 1, kind: input, shape index: {}]   ;;  %s1630_s2 = inlined_call_operand.vmem [shape: bf16[4,256,128], index: 2, kind: input, shape index: {}]   ;;  %s1631_s3 = inlined_call_operand.vmem [shape: f32[256,128], index: 3, kind: input, shape index: {}]   ;;  %s1632_s4 = inlined_call_operand.hbm [shape: f32[256,128], index: 4, kind: output, shape index: {}]  }
   0x1   :  { %1640 = sst [smem:[#allocation15_spill]] %s1629_s1  ;;  %s9_s17 = sshll.u32 %s1628_s0, 4  ;;  %s10_s17 = int_to_ptr.vmem [resolvable:$true] %s9_s17 }
   0x2   :  { %s1102_s18 = scalar_lea.vmem %s10_s17, 16  ;;  %p1107_p1 = scmp.lt.s32.totalorder %s10_s17, %s10_s17 }
   0x3   :  { %p1103_p0 = scmp.ne.s32.totalorder %s10_s17, %s1102_s18  ;;  %p1108_p2 = scmp.lt.s32.totalorder %s1102_s18, %s1102_s18 }
   0x5   :  { %p1109_p3 = por %p1108_p2, %p1107_p1 }
   0x7   :  { %p1110_p4 = pnand %p1109_p3, %p1103_p0 }
   0x9   :  { %1113 = shalt.err (!%p1110_p4)  }
   0xa   :  { %s1244_s19 = smov [#allocation3]  }
   0xb   :  { %12 = dma.vmem_to_smem %s10_s17, 16, %s1244_s19, [#allocation2] }
   0xc   :  { %1190 = dma.done.wait [#allocation2], 16 }
   0xd   :  { %1191 = vsyncadd [#allocation2], 4294967280 }
   0xe   :  { %14 = sfence }
   0xf   :  { %15 = vsyncpa [#allocation6], 0 }
  0x10   :  { %17 = vsyncpa [#allocation6 + $0x1], 0  ;;  %s1276_s20 = smov 0   ;;  %s1278_s21 = smov 0  }
  0x11   :  { %s1280_s0 = smov 0   ;;  %s1282_s22 = smov 0  }
  0x12   :  { %s1284_s23 = smov 0   ;;  %s1286_s24 = smov 0  }
  0x13   :  { %s1288_s25 = smov 0   ;;  %s1290_s26 = smov 0  }
  0x14   :  { %s1292_s27 = smov 0   ;;  %s1294_s28 = smov 0  }
  0x15   :  { %s1296_s29 = smov 0   ;;  %s1298_s30 = smov 0  }
  0x16 LB: > { %1641 = sst [smem:[#allocation9_spill]] %s1230_s27  ;;  %s35_s5 = sadd.s32 1, %s1230_s27  ;;  %s1242_s30 = sphi %s1298_s30, %s23_s30   ;;  %s1238_s29 = sphi %s1296_s29, %s1657_s29   ;;  %s1234_s28 = sphi %s1294_s28, %s1656_s28   ;;  %s1230_s27 = sphi %s1292_s27, %s1655_s27   ;;  %s1226_s26 = sphi %s1290_s26, %s1654_s26   ;;  %s1222_s25 = sphi %s1288_s25, %s1653_s25   ;;  %s1218_s24 = sphi %s1286_s24, %s1652_s24   ;;  %s1214_s23 = sphi %s1284_s23, %s1662_s23   ;;  %s1210_s22 = sphi %s1282_s22, %s1661_s22   ;;  %s1206_s0 = sphi %s1280_s0, %s1660_s0   ;;  %s1202_s21 = sphi %s1278_s21, %s1659_s21   ;;  %s1198_s20 = sphi %s1276_s20, %s1658_s20  }
  0x17   : > { %1642 = sst [smem:[#allocation10_spill]] %s1234_s28  ;;  %p36_p5 = scmp.ge.s32.totalorder %s35_s5, 2 }
  0x18   : > { %1643 = sst [smem:[#allocation11_spill]] %s1238_s29  ;;  %s38_s6 = sadd.s32 1, %s1234_s28 }
  0x19   : > { %s873_s7 = sadd.s32 4294967295, %s1242_s30   ;;  %p60_p6 = scmp.ne.s32.totalorder %s1214_s23, %s1210_s22 }
  0x1a   : > { %s1664_s5 = smov (%p36_p5, %s35_s5), 0  ;;  %s1666_s6 = smov (!%p36_p5, %s38_s6), %s1234_s28 }
  0x1b   : > { %1644 = sst [smem:[#allocation12_spill]] %s1664_s5  ;;  %s874_s8 = sadd.s32 4294967294, %s1242_s30  }
  0x1c   : > { %p61_p7 = scmp.eq.s32.totalorder %s1242_s30, 0  ;;  %p40_p8 = scmp.ge.s32.totalorder %s1666_s6, 4 }
  0x1d   : > { %s42_s9 = sadd.s32 1, %s1238_s29  ;;  %p143_p10 = scmp.ne.s32.totalorder %s1206_s0, %s1202_s21 }
  0x1e   : > { %p1347_p9 = por %p61_p7, %p60_p6  ;;  %s1668_s6 = smov (%p40_p8, %s1666_s6), 0 }
  0x1f   : > { %1646 = sst [smem:[#allocation13_spill]] %s1668_s6  ;;  %s1670_s9 = smov (!%p40_p8, %s42_s9), %s1238_s29 }
  0x20   : > { %s46_s11 = ssub.s32 %s1234_s28, %s1668_s6  ;;  %p144_p11 = scmp.eq.s32.totalorder %s873_s7, 15 }
  0x21   : > { %p44_p12 = scmp.ge.s32.totalorder %s1670_s9, 2  ;;  %p149_p13 = scmp.ne.s32.totalorder %s1202_s21, %s1198_s20 }
  0x22   : > { %p1360_p0 = por %p144_p11, %p143_p10  ;;  %p150_p1 = scmp.eq.s32.totalorder %s874_s8, 15 }
  0x23   : > { %s1672_s9 = smov (%p44_p12, %s1670_s9), 0  ;;  %s49_s13 = ssub.s32 %s1230_s27, %s1664_s5 }
  0x24   : > { %1648 = sst [smem:[#allocation14_spill]] %s1672_s9  ;;  %p1368_p2 = por %p150_p1, %p149_p13 }
  0x25   : > { %s47_s15 = ssub.s32 %s1238_s29, %s1672_s9  ;;  %s133_s16 = sadd.s32 1, %s1206_s0 }
  0x26   : > { %s48_s17 = sor.u32 %s47_s15, %s46_s11  ;;  %p131_p3 = scmp.eq.s32.totalorder %s47_s15, 0 }
  0x27   : > { %s50_s18 = sor.u32 %s49_s13, %s48_s17  ;;  %s53_s19 = sadd.s32 1, %s1214_s23 }
  0x28   : > { %p51_p4 = scmp.eq.s32.totalorder %s50_s18, 0  ;;  %p876_p5 = scmp.ge.s32.totalorder %s1242_s30, 16 }
  0x29   : > { %s1377_s7 = scalar_select %p131_p3, %s1206_s0, %s133_s16  }
  0x2a   : > { %s1380_s6 = scalar_select %p51_p4, %s1214_s23, %s53_s19  }
  0x2b   : > { %166 = sbr.rel (%p876_p5) target bundleno = 71 (0x47), region = 16 }
  0x32   : > { %169 = sbr.rel (!%p1347_p9) target bundleno = 71 (0x47), region = 20  ;;  %s171_s8 = sand.u32 (%p1347_p9), 1, %s1214_s23  }
  0x33   : > { %s914_s11 = sshll.u32 (%p1347_p9), %s1238_s29, 5  ;;  %s877_s15 = sshll.u32 (%p1347_p9), %s171_s8, 6 }
  0x34   : > { %s176_s13 = sadd.s32 (%p1347_p9), %s1230_s27, %s914_s11  ;;  %s880_s17 = sshll.u32 (%p1347_p9), %s1234_s28, 6 }
  0x35   : > { %s178_s18 = sadd.s32 (%p1347_p9), %s880_s17, %s176_s13  ;;  %s1650_s1 = sld [smem:[#allocation15_spill]] (%p1347_p9) }
  0x36   : > { %s881_s16 = sshll.u32 (%p1347_p9), %s178_s18, 2  ;;  %s173_s10 = scalar_lea.vmem (%p1347_p9), [#allocation4], %s877_s15 }
  0x3b   : > { %s1392_s5 = scalar_lea.vmem %s1650_s1, %s881_s16 }
  0x3c   : > { %v196_v0 = vld [vmem:[%s1392_s5] sm:$0xf]  ;;  %v198_v1 = vld [vmem:[%s1392_s5 + $0x8] sm:$0xf]  ;;  %v200_v2 = vld [vmem:[%s1392_s5 + $0x10] sm:$0xf] }
  0x3d   : > { %197 = vst [vmem:[%s173_s10] sm:$0xf] %v196_v0  ;;  %199 = vst [vmem:[%s173_s10 + $0x4] sm:$0xf] %v198_v1  ;;  %v202_v3 = vld [vmem:[%s1392_s5 + $0x18] sm:$0xf] }
  0x3e   : > { %201 = vst [vmem:[%s173_s10 + $0x8] sm:$0xf] %v200_v2  ;;  %v204_v4 = vld [vmem:[%s1392_s5 + $0x20] sm:$0xf]  ;;  %v206_v5 = vld [vmem:[%s1392_s5 + $0x28] sm:$0xf] }
  0x3f   : > { %203 = vst [vmem:[%s173_s10 + $0xc] sm:$0xf] %v202_v3  ;;  %205 = vst [vmem:[%s173_s10 + $0x10] sm:$0xf] %v204_v4  ;;  %v208_v6 = vld [vmem:[%s1392_s5 + $0x30] sm:$0xf] }
  0x40   : > { %207 = vst [vmem:[%s173_s10 + $0x14] sm:$0xf] %v206_v5  ;;  %v210_v7 = vld [vmem:[%s1392_s5 + $0x38] sm:$0xf]  ;;  %v212_v8 = vld [vmem:[%s1392_s5 + $0x40] sm:$0xf] }
  0x41   : > { %209 = vst [vmem:[%s173_s10 + $0x18] sm:$0xf] %v208_v6  ;;  %211 = vst [vmem:[%s173_s10 + $0x1c] sm:$0xf] %v210_v7  ;;  %v214_v9 = vld [vmem:[%s1392_s5 + $0x48] sm:$0xf] }
  0x42   : > { %213 = vst [vmem:[%s173_s10 + $0x20] sm:$0xf] %v212_v8  ;;  %v216_v10 = vld [vmem:[%s1392_s5 + $0x50] sm:$0xf]  ;;  %v218_v11 = vld [vmem:[%s1392_s5 + $0x58] sm:$0xf] }
  0x43   : > { %215 = vst [vmem:[%s173_s10 + $0x24] sm:$0xf] %v214_v9  ;;  %217 = vst [vmem:[%s173_s10 + $0x28] sm:$0xf] %v216_v10  ;;  %v220_v12 = vld [vmem:[%s1392_s5 + $0x60] sm:$0xf] }
  0x44   : > { %219 = vst [vmem:[%s173_s10 + $0x2c] sm:$0xf] %v218_v11  ;;  %v222_v13 = vld [vmem:[%s1392_s5 + $0x68] sm:$0xf]  ;;  %v224_v14 = vld [vmem:[%s1392_s5 + $0x70] sm:$0xf] }
  0x45   : > { %221 = vst [vmem:[%s173_s10 + $0x30] sm:$0xf] %v220_v12  ;;  %223 = vst [vmem:[%s173_s10 + $0x34] sm:$0xf] %v222_v13  ;;  %v226_v15 = vld [vmem:[%s1392_s5 + $0x78] sm:$0xf] }
  0x46   : > { %225 = vst [vmem:[%s173_s10 + $0x38] sm:$0xf] %v224_v14  ;;  %227 = vst [vmem:[%s173_s10 + $0x3c] sm:$0xf] %v226_v15 }
  0x47 PF: > { %p882_p6 = scmp.ge.s32.totalorder %s1242_s30, 1  ;;  %p303_p7 = scmp.lt.s32.totalorder %s1242_s30, 17 }
  0x49   : > { %p304_p8 = pnand %p882_p6, %p303_p7 }
  0x4a   : > { %s310_s9 = sand.u32 (!%p304_p8), 1, %s1210_s22   ;;  %s1636_s5 = sand.u32 (!%p304_p8), 1, %s1202_s21  }
  0x4b   : > { %307 = sbr.rel (%p304_p8) target bundleno = 406 (0x196), region = 69  ;;  %s883_s8 = sshll.u32 (!%p304_p8), %s310_s9, 6 }
  0x4c   : > { %s884_s11 = sshll.u32 (!%p304_p8), %s1636_s5, 7  ;;  %s885_s15 = sshll.u32 (!%p304_p8), %s1218_s24, 4 }
  0x4d   : > { %p349_p9 = scmp.lt.s32.totalorder (!%p304_p8), %s1222_s25, 3  ;;  %p351_p10 = scmp.lt.s32.totalorder (!%p304_p8), %s885_s15, 31 }
  0x4e   : > { %s888_s13 = sshll.u32 (!%p304_p8), %s1226_s26, 4  ;;  %p366_p12 = scmp.eq.s32.totalorder (!%p304_p8), %s1222_s25, 0 }
  0x4f   : > { %p359_p11 = scmp.lt.s32.totalorder (!%p304_p8), %s888_s13, 31  ;;  %p367_p13 = scmp.eq.s32.totalorder (!%p304_p8), %s1218_s24, 0 }
  0x50   : > { %s1432_s27 = scalar_lea.vmem (!%p304_p8), [#allocation4], %s883_s8 }
  0x51   : > { %p368_p1 = pnand (!%p304_p8), %p367_p13, %p366_p12 }
  0x52   : > { %s350_s17 = scalar_select %p349_p9, %s1222_s25, 3 }
  0x53   : > { %s1674_s15 = smov (!%p351_p10, %s885_s15), 31  ;;  %s1676_s13 = smov (!%p359_p11, %s888_s13), 31 }
  0x54   : > { %s886_s18 = sshll.u32 %s350_s17, 5  ;;  %s889_s9 = sshll.u32 %s1676_s13, 3 }
  0x55   : > { %s354_s16 = sadd.s32 %s886_s18, %s1674_s15  ;;  %s1430_s28 = scalar_lea.vmem %s1631_s3, %s889_s9 }
  0x56   : > { %s887_s19 = sshll.u32 %s354_s16, 2  ;;  %s1434_s17 = scalar_lea.vmem [#allocation5], %s884_s11  ;;  %v372_v16 = vld [vmem:[%s1430_s28] sm:$0xff] (!%p368_p1)  ;;  %v373_v17 = vld [vmem:[%s1430_s28 + $0x8] sm:$0xff] (!%p368_p1)  ;;  %v374_v18 = vld [vmem:[%s1430_s28 + $0x10] sm:$0xff] (!%p368_p1) }
  0x57   : > { %s1425_s22 = scalar_lea.vmem %s1630_s2, %s887_s19  ;;  %371 = sbr.rel (%p368_p1) target bundleno = 95 (0x5f), region = 77  ;;  %388 = vst [vmem:[%s1434_s17] sm:$0xff] (!%p368_p1), %v372_v16  ;;  %389 = vst [vmem:[%s1434_s17 + $0x8] sm:$0xff] (!%p368_p1), %v373_v17  ;;  %v375_v19 = vld [vmem:[%s1430_s28 + $0x18] sm:$0xff] (!%p368_p1)  ;;  %v376_v20 = vld [vmem:[%s1430_s28 + $0x20] sm:$0xff] (!%p368_p1) }
  0x58   : > { %390 = vst [vmem:[%s1434_s17 + $0x10] sm:$0xff] (!%p368_p1), %v374_v18  ;;  %v377_v21 = vld [vmem:[%s1430_s28 + $0x28] sm:$0xff] (!%p368_p1)  ;;  %391 = vst [vmem:[%s1434_s17 + $0x18] sm:$0xff] (!%p368_p1), %v375_v19  ;;  %v378_v22 = vld [vmem:[%s1430_s28 + $0x30] sm:$0xff] (!%p368_p1) }
  0x59   : > { %392 = vst [vmem:[%s1434_s17 + $0x20] sm:$0xff] (!%p368_p1), %v376_v20  ;;  %393 = vst [vmem:[%s1434_s17 + $0x28] sm:$0xff] (!%p368_p1), %v377_v21  ;;  %v379_v23 = vld [vmem:[%s1430_s28 + $0x38] sm:$0xff] (!%p368_p1)  ;;  %v380_v24 = vld [vmem:[%s1430_s28 + $0x40] sm:$0xff] (!%p368_p1) }
  0x5a   : > { %394 = vst [vmem:[%s1434_s17 + $0x30] sm:$0xff] (!%p368_p1), %v378_v22  ;;  %395 = vst [vmem:[%s1434_s17 + $0x38] sm:$0xff] (!%p368_p1), %v379_v23  ;;  %v381_v25 = vld [vmem:[%s1430_s28 + $0x48] sm:$0xff] (!%p368_p1)  ;;  %v382_v26 = vld [vmem:[%s1430_s28 + $0x50] sm:$0xff] (!%p368_p1) }
  0x5b   : > { %396 = vst [vmem:[%s1434_s17 + $0x40] sm:$0xff] (!%p368_p1), %v380_v24  ;;  %v383_v27 = vld [vmem:[%s1430_s28 + $0x58] sm:$0xff] (!%p368_p1)  ;;  %397 = vst [vmem:[%s1434_s17 + $0x48] sm:$0xff] (!%p368_p1), %v381_v25  ;;  %v384_v28 = vld [vmem:[%s1430_s28 + $0x60] sm:$0xff] (!%p368_p1) }
  0x5c   : > { %398 = vst [vmem:[%s1434_s17 + $0x50] sm:$0xff] (!%p368_p1), %v382_v26  ;;  %399 = vst [vmem:[%s1434_s17 + $0x58] sm:$0xff] (!%p368_p1), %v383_v27  ;;  %v385_v29 = vld [vmem:[%s1430_s28 + $0x68] sm:$0xff] (!%p368_p1)  ;;  %v386_v30 = vld [vmem:[%s1430_s28 + $0x70] sm:$0xff] (!%p368_p1) }
  0x5d   : > { %400 = vst [vmem:[%s1434_s17 + $0x60] sm:$0xff] (!%p368_p1), %v384_v28  ;;  %401 = vst [vmem:[%s1434_s17 + $0x68] sm:$0xff] (!%p368_p1), %v385_v29  ;;  %v387_v31 = vld [vmem:[%s1430_s28 + $0x78] sm:$0xff] (!%p368_p1) }
  0x5e   : > { %402 = vst [vmem:[%s1434_s17 + $0x70] sm:$0xff] %v386_v30  ;;  %403 = vst [vmem:[%s1434_s17 + $0x78] sm:$0xff] %v387_v31 }
  0x5f PF: > { %s890_s1 = sshll.u32 %s1226_s26, 2 }
  0x60   : > { %s405_s29 = sadd.s32 %s1222_s25, %s890_s1 }
  0x61   : > { %s891_s5 = sshll.u32 %s405_s29, 1 }
  0x62   : > { %s407_s8 = sadd.s32 %s1218_s24, %s891_s5 }
  0x63   : > { %s408_s11 = sld [smem:[#allocation3 + %s407_s8]] }
  0x69   : > { %p892_p3 = scmp.le.s32.totalorder %s408_s11, 0 }
  0x6a   : > { %v1086_v32 = vld [vmem:[%s1425_s22] sm:$0xff] (!%p892_p3)   ;;  %v1087_v33 = vld [vmem:[%s1425_s22 + $0x8] sm:$0xff] (!%p892_p3)   ;;  %v1088_v34 = vld [vmem:[%s1425_s22 + $0x10] sm:$0xff] (!%p892_p3)  }
  0x6b   : > { %412 = sbr.rel (%p892_p3) target bundleno = 365 (0x16d), region = 81  ;;  %932 = vmatprep.subr.bf16.mxu0 (!%p892_p3), %v1086_v32  ;;  %964 = vmatprep.subr.bf16.mxu1 (!%p892_p3), %v1086_v32  ;;  %v1089_v35 = vld [vmem:[%s1425_s22 + $0x18] sm:$0xff] (!%p892_p3)   ;;  %v1094_v36 = vld [vmem:[%s1432_s27] sm:$0xff] (!%p892_p3)   ;;  %v1091_v39 = vld [vmem:[%s1425_s22 + $0x28] sm:$0xff] (!%p892_p3)  }
  0x6c   : > { %933 = vmatpush3.bf16.msra.mxu0 (!%p892_p3), %v1086_v32  ;;  %972 = vmatpush3.bf16.msra.mxu1 (!%p892_p3), %v1086_v32  ;;  %v1095_v37 = vld [vmem:[%s1432_s27 + $0x20] sm:$0xff] (!%p892_p3)   ;;  %v1092_v40 = vld [vmem:[%s1425_s22 + $0x30] sm:$0xff] (!%p892_p3)   ;;  %v1093_v41 = vld [vmem:[%s1425_s22 + $0x38] sm:$0xff] (!%p892_p3)  }
  0x6d   : > { %934 = vmatprep.subr.bf16.mxu0 (!%p892_p3), %v1087_v33  ;;  %965 = vmatprep.subr.bf16.mxu1 (!%p892_p3), %v1087_v33  ;;  %v1090_v38 = vld [vmem:[%s1425_s22 + $0x20] sm:$0xff] (!%p892_p3)   ;;  %v1096_v42 = vld [vmem:[%s1432_s27 + $0x8] sm:$0xff] (!%p892_p3)   ;;  %v1098_v44 = vld [vmem:[%s1432_s27 + $0x10] sm:$0xff] (!%p892_p3)  }
  0x6e   : > { %948 = vmatprep.mubr.bf16.mxu0 (!%p892_p3), %v1094_v36  ;;  %956 = vmatprep.mubr.bf16.mxu1 (!%p892_p3), %v1095_v37  ;;  %v1097_v43 = vld [vmem:[%s1432_s27 + $0x28] sm:$0xff] (!%p892_p3)   ;;  %v1099_v45 = vld [vmem:[%s1432_s27 + $0x30] sm:$0xff] (!%p892_p3)   ;;  %v1100_v46 = vld [vmem:[%s1432_s27 + $0x18] sm:$0xff] (!%p892_p3)  }
  0x6f   : > { %v1101_v47 = vld [vmem:[%s1432_s27 + $0x38] sm:$0xff] (!%p892_p3)   ;;  %v415_v48 = vld [vmem:[%s1434_s17 + $0x10] sm:$0xff] (!%p892_p3)  ;;  %v413_v50 = vld [vmem:[%s1434_s17] sm:$0xff] (!%p892_p3) }
  0x70   : > { %935 = vmatpush3.bf16.msra.mxu0 (!%p892_p3), %v1087_v33  ;;  %973 = vmatpush3.bf16.msra.mxu1 (!%p892_p3), %v1087_v33  ;;  %v423_v49 = vld [vmem:[%s1434_s17 + $0x50] sm:$0xff] (!%p892_p3)  ;;  %v421_v51 = vld [vmem:[%s1434_s17 + $0x40] sm:$0xff] (!%p892_p3)  ;;  %v416_v54 = vld [vmem:[%s1434_s17 + $0x18] sm:$0xff] (!%p892_p3) }
  0x71   : > { %936 = vmatprep.subr.bf16.mxu0 (!%p892_p3), %v1088_v34  ;;  %966 = vmatprep.subr.bf16.mxu1 (!%p892_p3), %v1088_v34  ;;  %v424_v55 = vld [vmem:[%s1434_s17 + $0x58] sm:$0xff] (!%p892_p3)  ;;  %v414_v60 = vld [vmem:[%s1434_s17 + $0x8] sm:$0xff] (!%p892_p3)  ;;  %v419_v8 = vld [vmem:[%s1434_s17 + $0x30] sm:$0xff] (!%p892_p3) }
  0x72   : > { %v422_v61 = vld [vmem:[%s1434_s17 + $0x48] sm:$0xff]  ;;  %v427_v9 = vld [vmem:[%s1434_s17 + $0x70] sm:$0xff]  ;;  %v417_v10 = vld [vmem:[%s1434_s17 + $0x20] sm:$0xff] }
  0x73   : > { %v425_v11 = vld [vmem:[%s1434_s17 + $0x60] sm:$0xff]  ;;  %v420_v14 = vld [vmem:[%s1434_s17 + $0x38] sm:$0xff]  ;;  %v418_v20 = vld [vmem:[%s1434_s17 + $0x28] sm:$0xff] }
  0x74   : > { %937 = vmatpush3.bf16.msra.mxu0 %v1088_v34  ;;  %974 = vmatpush3.bf16.msra.mxu1 %v1088_v34  ;;  %v428_v15 = vld [vmem:[%s1434_s17 + $0x78] sm:$0xff]  ;;  %v426_v21 = vld [vmem:[%s1434_s17 + $0x68] sm:$0xff] }
  0x75   : > { %938 = vmatprep.subr.bf16.mxu0 %v1089_v35  ;;  %967 = vmatprep.subr.bf16.mxu1 %v1089_v35 }
  0x78   : > { %939 = vmatpush3.bf16.msra.mxu0 %v1089_v35  ;;  %975 = vmatpush3.bf16.msra.mxu1 %v1089_v35 }
  0x79   : > { %940 = vmatprep.subr.bf16.mxu0 %v1090_v38  ;;  %968 = vmatprep.subr.bf16.mxu1 %v1090_v38 }
  0x7c   : > { %941 = vmatpush3.bf16.msra.mxu0 %v1090_v38  ;;  %976 = vmatpush3.bf16.msra.mxu1 %v1090_v38 }
  0x7d   : > { %942 = vmatprep.subr.bf16.mxu0 %v1091_v39  ;;  %969 = vmatprep.subr.bf16.mxu1 %v1091_v39 }
  0x80   : > { %943 = vmatpush3.bf16.msra.mxu0 %v1091_v39  ;;  %977 = vmatpush3.bf16.msra.mxu1 %v1091_v39 }
  0x81   : > { %944 = vmatprep.subr.bf16.mxu0 %v1092_v40  ;;  %970 = vmatprep.subr.bf16.mxu1 %v1092_v40 }
  0x84   : > { %945 = vmatpush3.bf16.msra.mxu0 %v1092_v40  ;;  %978 = vmatpush3.bf16.msra.mxu1 %v1092_v40 }
  0x85   : > { %946 = vmatprep.subr.bf16.mxu0 %v1093_v41  ;;  %971 = vmatprep.subr.bf16.mxu1 %v1093_v41 }
  0x88   : > { %947 = vmatpush3.bf16.msra.mxu0 %v1093_v41  ;;  %979 = vmatpush3.bf16.msra.mxu1 %v1093_v41 }
  0x8b   : > { %949 = vmatmul.mubr.bf16.vlgmr.msra.gmra.mrb[0].mxu0 %v1096_v42  ;;  %957 = vmatmul.mubr.bf16.vlgmr.msra.gmra.mrb[0].mxu1 %v1097_v43 }
  0x8c   : > { %952 = vmatprep.mubr.bf16.mxu0 %v1098_v44  ;;  %960 = vmatprep.mubr.bf16.mxu1 %v1099_v45 }
  0x93   : > { %953 = vmatmul.mubr.bf16.gmra.mrb[4].mxu0 %v1100_v46  ;;  %961 = vmatmul.mubr.bf16.gmra.mrb[4].mxu1 %v1101_v47 }
 0x15e   : > { %v950_v52 = vpop.f32.mrb[0].mxu0  ;;  %v958_v53 = vpop.f32.mrb[0].mxu1 }
 0x15f   : > { %v656_v56 = vadd.f32 %v950_v52, %v415_v48  ;;  %v664_v57 = vadd.f32 %v958_v53, %v423_v49  ;;  %v591_v58 = vpop.f32.mrb[1].mxu0  ;;  %v623_v59 = vpop.f32.mrb[1].mxu1 }
 0x160   : > { %v654_v62 = vadd.f32 %v591_v58, %v413_v50  ;;  %v662_v63 = vadd.f32 %v623_v59, %v421_v51  ;;  %v951_v0 = vpop.f32.mrb[2].mxu0  ;;  %v959_v1 = vpop.f32.mrb[2].mxu1 }
 0x161   : > { %672 = vst [vmem:[%s1434_s17 + $0x10] sm:$0xff] %v656_v56  ;;  %680 = vst [vmem:[%s1434_s17 + $0x50] sm:$0xff] %v664_v57  ;;  %v657_v2 = vadd.f32 %v951_v0, %v416_v54  ;;  %v665_v3 = vadd.f32 %v959_v1, %v424_v55  ;;  %v594_v4 = vpop.f32.mrb[3].mxu0  ;;  %v626_v5 = vpop.f32.mrb[3].mxu1 }
 0x162   : > { %670 = vst [vmem:[%s1434_s17] sm:$0xff] %v654_v62  ;;  %678 = vst [vmem:[%s1434_s17 + $0x40] sm:$0xff] %v662_v63  ;;  %v655_v6 = vadd.f32 %v594_v4, %v414_v60  ;;  %v663_v7 = vadd.f32 %v626_v5, %v422_v61 }
 0x163   : > { %673 = vst [vmem:[%s1434_s17 + $0x18] sm:$0xff] %v657_v2  ;;  %681 = vst [vmem:[%s1434_s17 + $0x58] sm:$0xff] %v665_v3 }
 0x164   : > { %671 = vst [vmem:[%s1434_s17 + $0x8] sm:$0xff] %v655_v6  ;;  %679 = vst [vmem:[%s1434_s17 + $0x48] sm:$0xff] %v663_v7 }
 0x166   : > { %v954_v12 = vpop.f32.mrb[4].mxu0  ;;  %v962_v13 = vpop.f32.mrb[4].mxu1 }
 0x167   : > { %v660_v16 = vadd.f32 %v954_v12, %v419_v8  ;;  %v668_v17 = vadd.f32 %v962_v13, %v427_v9  ;;  %v607_v18 = vpop.f32.mrb[5].mxu0  ;;  %v639_v19 = vpop.f32.mrb[5].mxu1 }
 0x168   : > { %v658_v22 = vadd.f32 %v607_v18, %v417_v10  ;;  %v666_v23 = vadd.f32 %v639_v19, %v425_v11  ;;  %v955_v24 = vpop.f32.mrb[6].mxu0  ;;  %v963_v25 = vpop.f32.mrb[6].mxu1 }
 0x169   : > { %676 = vst [vmem:[%s1434_s17 + $0x30] sm:$0xff] %v660_v16  ;;  %684 = vst [vmem:[%s1434_s17 + $0x70] sm:$0xff] %v668_v17  ;;  %v661_v26 = vadd.f32 %v955_v24, %v420_v14  ;;  %v669_v27 = vadd.f32 %v963_v25, %v428_v15  ;;  %v610_v28 = vpop.f32.mrb[7].mxu0  ;;  %v642_v29 = vpop.f32.mrb[7].mxu1 }
 0x16a   : > { %674 = vst [vmem:[%s1434_s17 + $0x20] sm:$0xff] %v658_v22  ;;  %682 = vst [vmem:[%s1434_s17 + $0x60] sm:$0xff] %v666_v23  ;;  %v659_v30 = vadd.f32 %v610_v28, %v418_v20  ;;  %v667_v31 = vadd.f32 %v642_v29, %v426_v21 }
 0x16b   : > { %677 = vst [vmem:[%s1434_s17 + $0x38] sm:$0xff] %v661_v26  ;;  %685 = vst [vmem:[%s1434_s17 + $0x78] sm:$0xff] %v669_v27 }
 0x16c   : > { %675 = vst [vmem:[%s1434_s17 + $0x28] sm:$0xff] %v659_v30  ;;  %683 = vst [vmem:[%s1434_s17 + $0x68] sm:$0xff] %v667_v31 }
 0x16d PF: > { %p686_p4 = scmp.eq.s32.totalorder %s1222_s25, 3  ;;  %p687_p5 = scmp.eq.s32.totalorder %s1218_s24, 1 }
 0x16f   : > { %p688_p6 = pnand %p687_p5, %p686_p4 }
 0x170   : > { %v692_v32 = vld [vmem:[%s1434_s17] sm:$0xff] (!%p688_p6)  ;;  %v693_v33 = vld [vmem:[%s1434_s17 + $0x8] sm:$0xff] (!%p688_p6)  ;;  %v694_v34 = vld [vmem:[%s1434_s17 + $0x10] sm:$0xff] (!%p688_p6) }
 0x171   : > { %691 = sbr.rel (%p688_p6) target bundleno = 380 (0x17c), region = 85  ;;  %v708_v35 = vmax.f32 (!%p688_p6), %v692_v32, 0.0  ;;  %v709_v36 = vmax.f32 (!%p688_p6), %v693_v33, 0.0  ;;  %v710_v37 = vmax.f32 (!%p688_p6), %v694_v34, 0.0  ;;  %v695_v38 = vld [vmem:[%s1434_s17 + $0x18] sm:$0xff] (!%p688_p6)  ;;  %v696_v39 = vld [vmem:[%s1434_s17 + $0x20] sm:$0xff] (!%p688_p6) }
 0x172   : > { %v711_v41 = vmax.f32 (!%p688_p6), %v695_v38, 0.0  ;;  %v712_v42 = vmax.f32 (!%p688_p6), %v696_v39, 0.0  ;;  %v698_v44 = vld [vmem:[%s1434_s17 + $0x30] sm:$0xff] (!%p688_p6)  ;;  %v699_v45 = vld [vmem:[%s1434_s17 + $0x38] sm:$0xff] (!%p688_p6)  ;;  %v700_v46 = vld [vmem:[%s1434_s17 + $0x40] sm:$0xff] (!%p688_p6) }
 0x173   : > { %v697_v40 = vld [vmem:[%s1434_s17 + $0x28] sm:$0xff] (!%p688_p6)  ;;  %724 = vst [vmem:[%s1434_s17] sm:$0xff] (!%p688_p6), %v708_v35  ;;  %725 = vst [vmem:[%s1434_s17 + $0x8] sm:$0xff] (!%p688_p6), %v709_v36  ;;  %v714_v47 = vmax.f32 (!%p688_p6), %v698_v44, 0.0  ;;  %v715_v48 = vmax.f32 (!%p688_p6), %v699_v45, 0.0  ;;  %v716_v49 = vmax.f32 (!%p688_p6), %v700_v46, 0.0  ;;  %v702_v51 = vld [vmem:[%s1434_s17 + $0x50] sm:$0xff] (!%p688_p6) }
 0x174   : > { %v713_v43 = vmax.f32 (!%p688_p6), %v697_v40, 0.0  ;;  %726 = vst [vmem:[%s1434_s17 + $0x10] sm:$0xff] (!%p688_p6), %v710_v37  ;;  %v701_v50 = vld [vmem:[%s1434_s17 + $0x48] sm:$0xff] (!%p688_p6)  ;;  %v703_v52 = vld [vmem:[%s1434_s17 + $0x58] sm:$0xff] (!%p688_p6)  ;;  %727 = vst [vmem:[%s1434_s17 + $0x18] sm:$0xff] (!%p688_p6), %v711_v41  ;;  %v718_v54 = vmax.f32 (!%p688_p6), %v702_v51, 0.0 }
 0x175   : > { %728 = vst [vmem:[%s1434_s17 + $0x20] sm:$0xff] (!%p688_p6), %v712_v42  ;;  %v717_v53 = vmax.f32 (!%p688_p6), %v701_v50, 0.0  ;;  %v719_v55 = vmax.f32 (!%p688_p6), %v703_v52, 0.0  ;;  %v704_v56 = vld [vmem:[%s1434_s17 + $0x60] sm:$0xff] (!%p688_p6)  ;;  %v705_v57 = vld [vmem:[%s1434_s17 + $0x68] sm:$0xff] (!%p688_p6)  ;;  %v706_v58 = vld [vmem:[%s1434_s17 + $0x70] sm:$0xff] (!%p688_p6) }
 0x176   : > { %729 = vst [vmem:[%s1434_s17 + $0x28] sm:$0xff] (!%p688_p6), %v713_v43  ;;  %730 = vst [vmem:[%s1434_s17 + $0x30] sm:$0xff] (!%p688_p6), %v714_v47  ;;  %v720_v59 = vmax.f32 (!%p688_p6), %v704_v56, 0.0  ;;  %v721_v60 = vmax.f32 (!%p688_p6), %v705_v57, 0.0  ;;  %v722_v61 = vmax.f32 (!%p688_p6), %v706_v58, 0.0  ;;  %v707_v62 = vld [vmem:[%s1434_s17 + $0x78] sm:$0xff] (!%p688_p6) }
 0x177   : > { %731 = vst [vmem:[%s1434_s17 + $0x38] sm:$0xff] (!%p688_p6), %v715_v48  ;;  %732 = vst [vmem:[%s1434_s17 + $0x40] sm:$0xff] (!%p688_p6), %v716_v49  ;;  %v723_v63 = vmax.f32 (!%p688_p6), %v707_v62, 0.0 }
 0x178   : > { %733 = vst [vmem:[%s1434_s17 + $0x48] sm:$0xff] %v717_v53  ;;  %734 = vst [vmem:[%s1434_s17 + $0x50] sm:$0xff] %v718_v54 }
 0x179   : > { %735 = vst [vmem:[%s1434_s17 + $0x58] sm:$0xff] %v719_v55  ;;  %736 = vst [vmem:[%s1434_s17 + $0x60] sm:$0xff] %v720_v59 }
 0x17a   : > { %737 = vst [vmem:[%s1434_s17 + $0x68] sm:$0xff] %v721_v60  ;;  %738 = vst [vmem:[%s1434_s17 + $0x70] sm:$0xff] %v722_v61 }
 0x17b   : > { %739 = vst [vmem:[%s1434_s17 + $0x78] sm:$0xff] %v723_v63 }
 0x17c PF: > { %s915_s24 = sshll.u32 %s1226_s26, 11  ;;  %s754_s15 = sshll.u32 %s1434_s17, 4  ;;  %s1560_s15 = int_to_ptr.vmem [resolvable:$true] %s754_s15 }
 0x17d   : > { %s1557_s28 = scalar_lea.hbm %s1632_s4, %s915_s24  ;;  %s1651_s13 = sand.u32 1, %s1202_s21  }
 0x17e   : > { %s1564_s18 = scalar_lea.sflag [#allocation6], %s1651_s13  ;;  %s1114_s16 = scalar_lea.vmem %s1560_s15, 2048 }
 0x17f   : > { %p1115_p7 = scmp.ne.s32.totalorder %s1560_s15, %s1114_s16  ;;  %s1245_s26 = smov [#allocation5]  }
 0x180   : > { %s1118_s19 = sshll.u32 %s1245_s26, 4  ;;  %s1119_s19 = int_to_ptr.vmem [resolvable:$false] %s1118_s19 }
 0x181   : > { %p1116_p8 = pnand %p1115_p7, %p1360_p0  ;;  %s1120_s10 = scalar_lea.vmem %s1119_s19, 4096 }
 0x182   : > { %p1121_p10 = scmp.lt.s32.totalorder %s1560_s15, %s1119_s19  ;;  %p1122_p11 = scmp.lt.s32.totalorder %s1120_s10, %s1114_s16 }
 0x183   : > { %p1117_p9 = pneg %p1116_p8 }
 0x184   : > { %p1123_p12 = por %p1122_p11, %p1121_p10 }
 0x186   : > { %p1124_p13 = pnand %p1123_p12, %p1117_p9 }
 0x188   : > { %1127 = shalt.err (!%p1124_p13)
}
 0x189   : > { %s1128_s22 = scalar_lea.hbm %s1557_s28, 2048  ;;  %s1132_s1 = scalar_lea.hbm %s1632_s4, 4096 }
 0x18a   : > { %p1129_p1 = scmp.ne.s32.totalorder %s1557_s28, %s1128_s22  ;;  %p1133_p5 = scmp.lt.u32.totalorder %s1557_s28, %s1632_s4 }
 0x18b   : > { %p1134_p6 = scmp.lt.u32.totalorder %s1132_s1, %s1128_s22  ;;  %p1136_p8 = scmp.lt.u32.totalorder %s1128_s22, %s1557_s28 }
 0x18c   : > { %p1130_p3 = pnand %p1129_p1, %p1360_p0 }
 0x18d   : > { %p1135_p7 = por %p1134_p6, %p1133_p5 }
 0x18e   : > { %p1131_p4 = pneg %p1130_p3 }
 0x18f   : > { %p1137_p9 = por %p1136_p8, %p1135_p7 }
 0x191   : > { %p1138_p10 = pnand %p1137_p9, %p1131_p4 }
 0x193   : > { %1141 = shalt.err (!%p1138_p10)
}
 0x194   : > { %s1246_s8 = smov 128   ;;  %s1247_s11 = smov 8  }
 0x195   : > { %980 = dma.vmem_to_hbm [thread:$0]  (%p1360_p0), %s1560_s15, 2048, %s1557_s28, %s1564_s18, %s1246_s8, %s1246_s8, %s1247_s11  }
 0x196 PF: > { %p986_p11 = scmp.ge.s32.totalorder %s1242_s30, 2  ;;  %s769_s24 = sand.u32 1, %s1198_s20  }
 0x197   : > { %s770_s25 = scalar_lea.sflag [#allocation6], %s769_s24 }
 0x198   : > { %p983_p12 = pnand %p986_p11, %p1368_p2 }
 0x19a   : > { %1193 = dma.done.wait (!%p983_p12), %s770_s25, 2048  }
 0x19b   : > { %1195 = vsyncadd (!%p983_p12), %s770_s25, 4294965248  ;;  %s23_s30 = sadd.s32 1, %s1242_s30   ;;  %s1652_s24 = sld [smem:[#allocation9_spill]] }
 0x19c   : > { %p20_p13 = scmp.ge.s32.totalorder %s23_s30, 18   ;;  %s1653_s25 = sld [smem:[#allocation10_spill]] }
 0x19d   : > { %s1654_s26 = sld [smem:[#allocation11_spill]]  ;;  %s1655_s27 = sld [smem:[#allocation12_spill]] }
 0x19e   : > { %s1656_s28 = sld [smem:[#allocation13_spill]]  ;;  %s1657_s29 = sld [smem:[#allocation14_spill]] }
 0x19f   : > { %s1658_s20 = smov %s1202_s21  ;;  %s1659_s21 = smov %s1206_s0 }
 0x1a0   : > { %s1660_s0 = smov %s1377_s7  ;;  %s1661_s22 = smov %s1214_s23 }
 0x1a1   : > { %s1662_s23 = smov %s1380_s6  ;;  %22 = sbr.rel (!%p20_p13) target bundleno = 22 (0x16), region = 131 }
 0x1a8   :  { %775 = vsyncpa [#allocation6], 1 }
 0x1a9   :  { %777 = vsyncpa [#allocation6 + $0x1], 1 }

</bundles_post_ra>
